<compile_context>
chip_gen: v5e
topology: v5e:2x2
jax: 0.10.0
libtpu: 0.0.40
codegen_flags: <defaults>
</compile_context>

<pallas_src>
import math
import functools

import jax
import jax.numpy as jnp
from jax.experimental import pallas as pl
from jax.experimental.pallas import tpu as pltpu


# Explicit scoped-VMEM limit: v5e's default is only 16 MiB, v7x physical VMEM
# is 64 MiB -> 48 MiB is safe on every generation.  Block budget ~6 MiB keeps
# double-buffered in+out (~24 MiB) plus in-kernel f32 temporaries well inside.
_VMEM_LIMIT_BYTES = 48 * 1024 * 1024
_DEFAULT_BLOCK_BUDGET_BYTES = 6 * 1024 * 1024


# ----------------------------------------------------------------------------
# Kernels
# ----------------------------------------------------------------------------
def _adain_fast_kernel(gamma_ref, beta_ref, x_ref, o_ref, *, eps):
    """Single-pass AdaIN: stats over the full spatial row + fused affine."""
    # gamma_ref / beta_ref: (TC, 1) f32 ; x_ref / o_ref: (TC, HW)
    # TODO(synk): for bf16/fp8 inputs, compute the reductions with
    # dtype=jnp.float32 on the narrow block instead of materializing an f32 copy.
    x = x_ref[...].astype(jnp.float32)                      # no-op for f32 in
    mean = jnp.mean(x, axis=-1, keepdims=True)
    d = x - mean
    var = jnp.mean(d * d, axis=-1, keepdims=True)
    scale = gamma_ref[...] * jax.lax.rsqrt(var + eps)       # (TC, 1)
    shift = beta_ref[...] - mean * scale                    # (TC, 1)
    o_ref[...] = (x * scale + shift).astype(o_ref.dtype)


def _adain_stats_kernel(x_ref, mean_ref, rstd_ref, *, hw, ts, eps):
    """Two-pass path, pass 1: accumulate per-channel sum / sumsq over spatial
    blocks (resident output refs across the 'arbitrary' spatial grid axis),
    finalize to mean / rstd on the last spatial step."""
    s = pl.program_id(2)

    @pl.when(s == 0)
    def _():
        mean_ref[...] = jnp.zeros_like(mean_ref)
        rstd_ref[...] = jnp.zeros_like(rstd_ref)

    x = x_ref[...].astype(jnp.float32)                      # (TC, TS)
    if hw % ts != 0:
        # Only the final partial spatial block carries padded (garbage) lanes;
        # mask them out of the statistics.
        col = jax.lax.broadcasted_iota(jnp.int32, x.shape, 1) + s * ts
        x = jnp.where(col < hw, x, 0.0)

    mean_ref[...] += jnp.sum(x, axis=-1, keepdims=True)
    rstd_ref[...] += jnp.sum(x * x, axis=-1, keepdims=True)

    @pl.when(s == pl.num_programs(2) - 1)
    def _():
        inv_n = jnp.float32(1.0 / hw)
        m = mean_ref[...] * inv_n
        v = rstd_ref[...] * inv_n - m * m
        mean_ref[...] = m
        rstd_ref[...] = jax.lax.rsqrt(v + eps)


def _adain_apply_kernel(gamma_ref, beta_ref, mean_ref, rstd_ref, x_ref, o_ref):
    """Two-pass path, pass 2: fully parallel fused elementwise apply."""
    scale = gamma_ref[...] * rstd_ref[...]                  # (TC, 1)
    shift = beta_ref[...] - mean_ref[...] * scale           # (TC, 1)
    o_ref[...] = (x_ref[...].astype(jnp.float32) * scale + shift).astype(o_ref.dtype)


# ----------------------------------------------------------------------------
# Tiling
# ----------------------------------------------------------------------------
def _choose_tiles(N, C, HW, itemsize, block_budget_bytes):
    """Pick (channel_tile, spatial_tile).

    spatial_tile == HW  -> single-pass kernel (stats over the full row).
    spatial_tile <  HW  -> two-pass (stats + apply) with a spatial grid axis,
                           used when even an 8-channel full-HW block would
                           exceed the per-block VMEM budget (large H*W).
    """
    row_bytes = HW * itemsize
    if min(C, 8) * row_bytes <= block_budget_bytes:
        max_tc = block_budget_bytes // row_bytes
        tc = C if C <= max_tc else (max_tc // 8) * 8
        # v7x has 2 TensorCores sharded over "parallel" grid axes: make sure
        # there are >= 2 grid blocks whenever the channel axis allows it.
        if N * ((C + tc - 1) // tc) < 2 and C > 8:
            tc = (((C + 1) // 2) + 7) // 8 * 8
        return tc, HW
    # Fallback: spatial tiling. tc is 8 sublanes (or full C if C < 8); ts is
    # the largest lane-dense multiple of 128 that fits the block budget.
    tc = C if C < 8 else 8
    ts = max(128, block_budget_bytes // (tc * itemsize) // 128 * 128)
    if ts >= HW:  # pathological tiny budget / tiny HW -> just use single pass
        return tc, HW
    return tc, ts


# ----------------------------------------------------------------------------
# pallas_call wrappers
# ----------------------------------------------------------------------------
def _adain_fast(gamma, beta, x3, tc, eps):
    N, C, HW = x3.shape
    grid = (N, pl.cdiv(C, tc))
    vec_spec = pl.BlockSpec((pl.Squeezed(), tc, 1), lambda n, c: (n, c, 0))
    blk_spec = pl.BlockSpec((pl.Squeezed(), tc, HW), lambda n, c: (n, c, 0))
    return pl.pallas_call(
        functools.partial(_adain_fast_kernel, eps=eps),
        out_shape=jax.ShapeDtypeStruct((N, C, HW), x3.dtype),
        grid_spec=pltpu.PrefetchScalarGridSpec(
            num_scalar_prefetch=0,
            grid=grid,
            in_specs=[vec_spec, vec_spec, blk_spec],
            out_specs=blk_spec,
        ),
        compiler_params=pltpu.CompilerParams(
            dimension_semantics=("parallel", "parallel"),
            vmem_limit_bytes=_VMEM_LIMIT_BYTES),
    )(gamma, beta, x3)


def _adain_stats(x3, tc, ts, eps):
    N, C, HW = x3.shape
    grid = (N, pl.cdiv(C, tc), pl.cdiv(HW, ts))
    stat_spec = pl.BlockSpec((pl.Squeezed(), tc, 1), lambda n, c, s: (n, c, 0))
    return pl.pallas_call(
        functools.partial(_adain_stats_kernel, hw=HW, ts=ts, eps=eps),
        out_shape=(jax.ShapeDtypeStruct((N, C, 1), jnp.float32),
                   jax.ShapeDtypeStruct((N, C, 1), jnp.float32)),
        grid_spec=pltpu.PrefetchScalarGridSpec(
            num_scalar_prefetch=0,
            grid=grid,
            in_specs=[
                pl.BlockSpec((pl.Squeezed(), tc, ts), lambda n, c, s: (n, c, s)),
            ],
            out_specs=(stat_spec, stat_spec),
        ),
        compiler_params=pltpu.CompilerParams(
            dimension_semantics=("parallel", "parallel", "arbitrary"),
            vmem_limit_bytes=_VMEM_LIMIT_BYTES),
    )(x3)


def _adain_apply(gamma, beta, mean, rstd, x3, tc, ts):
    N, C, HW = x3.shape
    grid = (N, pl.cdiv(C, tc), pl.cdiv(HW, ts))
    vec_spec = pl.BlockSpec((pl.Squeezed(), tc, 1), lambda n, c, s: (n, c, 0))
    blk_spec = pl.BlockSpec((pl.Squeezed(), tc, ts), lambda n, c, s: (n, c, s))
    return pl.pallas_call(
        _adain_apply_kernel,
        out_shape=jax.ShapeDtypeStruct((N, C, HW), x3.dtype),
        grid_spec=pltpu.PrefetchScalarGridSpec(
            num_scalar_prefetch=0,
            grid=grid,
            in_specs=[vec_spec, vec_spec, vec_spec, vec_spec, blk_spec],
            out_specs=blk_spec,
        ),
        compiler_params=pltpu.CompilerParams(
            dimension_semantics=("parallel", "parallel", "parallel"),
            vmem_limit_bytes=_VMEM_LIMIT_BYTES),
    )(gamma, beta, mean, rstd, x3)


# ----------------------------------------------------------------------------
# Public entry point
# ----------------------------------------------------------------------------
def adaptive_instance_norm_2d(x, style, weight, bias, *, eps=1e-5,
                              block_budget_bytes=_DEFAULT_BLOCK_BUDGET_BYTES):
    """x: (N, C, H, W), style: (N, S), weight: (2C, S), bias: (2C,)."""
    N, C, H, W = x.shape
    S = style.shape[1]
    HW = H * W
    he_scale = math.sqrt(2.0 / S)  # He factor for nn.Linear(S, 2C), lrMul=1

    # EqualizedLinear hoisted out of the kernel; the whole Linear output
    # (bias included) is scaled, matching ConstrainedLayer.forward.
    st = (style.astype(jnp.float32) @ weight.T.astype(jnp.float32)
          + bias.astype(jnp.float32)) * he_scale                     # (N, 2C)
    gamma = st[:, :C].reshape(N, C, 1)                               # (N, C, 1) f32
    beta = st[:, C:].reshape(N, C, 1)                                # (N, C, 1) f32

    # No padding / slicing: the spatial axis stays at its full HW extent.
    x3 = x.reshape(N, C, HW)
    tc, ts = _choose_tiles(N, C, HW, x3.dtype.itemsize, block_budget_bytes)

    if ts == HW:
        out = _adain_fast(gamma, beta, x3, tc, eps)
    else:
        mean, rstd = _adain_stats(x3, tc, ts, eps)
        out = _adain_apply(gamma, beta, mean, rstd, x3, tc, ts)
    return out.reshape(N, C, H, W)


# ----------------------------------------------------------------------------
# Pure-JAX reference (mirrors the PyTorch module)
# ----------------------------------------------------------------------------
def _reference(x, style, weight, bias, eps=1e-5):
    N, C, H, W = x.shape
    S = style.shape[1]
    he = math.sqrt(2.0 / S)
    st = (style @ weight.T + bias) * he                    # (N, 2C)
    gamma = st[:, :C].reshape(N, C, 1, 1)
    beta = st[:, C:].reshape(N, C, 1, 1)
    mean = jnp.mean(x, axis=(2, 3), keepdims=True)
    var = jnp.mean((x - mean) ** 2, axis=(2, 3), keepdims=True)
    norm = (x - mean) / jnp.sqrt(var + eps)
    return gamma * norm + beta


if __name__ == "__main__":
    key = jax.random.PRNGKey(0)

    cases = [
        # (N, C, H, W, style_dim, block_budget_bytes or None)
        (2, 4, 16, 16, 8, None),    # single-pass, HW % 128 == 0
        (1, 16, 15, 17, 8, None),   # single-pass, HW % 128 != 0, v7x tile split
        (2, 8, 16, 17, 8, 4096),    # forced two-pass (spatial-tiled) path
    ]

    for idx, (N, C, H, W, S, budget) in enumerate(cases):
        k = jax.random.fold_in(key, idx)
        k_x, k_s, k_w = jax.random.split(k, 3)
        x = jax.random.normal(k_x, (N, C, H, W), dtype=jnp.float32)
        style = jax.random.normal(k_s, (N, S), dtype=jnp.float32)

        # EqualizedLinear params mirroring the module __init__:
        #   weight ~ N(0, 1) shape (2C, S); bias[:C] = 1, bias[C:] = 0
        weight = jax.random.normal(k_w, (2 * C, S), dtype=jnp.float32)
        bias = jnp.concatenate(
            [jnp.ones((C,), jnp.float32), jnp.zeros((C,), jnp.float32)])

        kwargs = {} if budget is None else {"block_budget_bytes": budget}
        out = adaptive_instance_norm_2d(x, style, weight, bias, **kwargs)
        out = jax.block_until_ready(out)

        ref = _reference(x, style, weight, bias)
        assert out.shape == (N, C, H, W)
        assert jnp.allclose(out, ref, atol=1e-4, rtol=1e-4), \
            f"case {idx} mismatch vs reference"

    print("KERNEL_OK")
</pallas_src>

<mosaic_0001>
module attributes {stable_mosaic.version = 11 : i64} {
  func.func @_adain_fast_kernel(%arg0: i32, %arg1: i32, %arg2: memref<1x4x1xf32, #tpu.memory_space<vmem>>, %arg3: memref<1x4x1xf32, #tpu.memory_space<vmem>>, %arg4: memref<1x4x256xf32, #tpu.memory_space<vmem>>, %arg5: memref<1x4x256xf32, #tpu.memory_space<vmem>>) attributes {dimension_semantics = [#tpu.dimension_semantics<parallel>, #tpu.dimension_semantics<parallel>], iteration_bounds = array<i64: 2, 1>, scalar_prefetch = 0 : i64, scratch_operands = 0 : i64, tpu.core_type = #tpu.core_type<tc>, window_params = [{transform_indices = @transform_0, window_bounds = array<i64: 1, 4, 1>}, {transform_indices = @transform_1, window_bounds = array<i64: 1, 4, 1>}, {transform_indices = @transform_2, window_bounds = array<i64: 1, 4, 256>}, {transform_indices = @transform_3, window_bounds = array<i64: 1, 4, 256>}]} {
    %c0 = arith.constant 0 : index
    %c0_0 = arith.constant 0 : index
    %c0_1 = arith.constant 0 : index
    %0 = vector.load %arg4[%c0, %c0_0, %c0_1] : memref<1x4x256xf32, #tpu.memory_space<vmem>>, vector<1x4x256xf32>
    %1 = vector.shape_cast %0 : vector<1x4x256xf32> to vector<4x256xf32>
    %cst = arith.constant dense<0.000000e+00> : vector<4xf32>
    %2 = vector.multi_reduction <add>, %1, %cst [1] : vector<4x256xf32> to vector<4xf32>
    %3 = vector.shape_cast %2 : vector<4xf32> to vector<4x1xf32>
    %cst_2 = arith.constant 2.560000e+02 : f32
    %4 = vector.broadcast %cst_2 : f32 to vector<4x1xf32>
    %5 = arith.divf %3, %4 : vector<4x1xf32>
    %6 = vector.broadcast %5 : vector<4x1xf32> to vector<4x256xf32>
    %7 = arith.subf %1, %6 : vector<4x256xf32>
    %8 = arith.mulf %7, %7 : vector<4x256xf32>
    %cst_3 = arith.constant dense<0.000000e+00> : vector<4xf32>
    %9 = vector.multi_reduction <add>, %8, %cst_3 [1] : vector<4x256xf32> to vector<4xf32>
    %10 = vector.shape_cast %9 : vector<4xf32> to vector<4x1xf32>
    %cst_4 = arith.constant 2.560000e+02 : f32
    %11 = vector.broadcast %cst_4 : f32 to vector<4x1xf32>
    %12 = arith.divf %10, %11 : vector<4x1xf32>
    %c0_5 = arith.constant 0 : index
    %c0_6 = arith.constant 0 : index
    %c0_7 = arith.constant 0 : index
    %13 = vector.load %arg2[%c0_5, %c0_6, %c0_7] : memref<1x4x1xf32, #tpu.memory_space<vmem>>, vector<1x4x1xf32>
    %14 = vector.shape_cast %13 : vector<1x4x1xf32> to vector<4x1xf32>
    %cst_8 = arith.constant 9.99999974E-6 : f32
    %15 = vector.broadcast %cst_8 : f32 to vector<4x1xf32>
    %16 = arith.addf %12, %15 : vector<4x1xf32>
    %17 = math.rsqrt %16 : vector<4x1xf32>
    %18 = arith.mulf %14, %17 : vector<4x1xf32>
    %c0_9 = arith.constant 0 : index
    %c0_10 = arith.constant 0 : index
    %c0_11 = arith.constant 0 : index
    %19 = vector.load %arg3[%c0_9, %c0_10, %c0_11] : memref<1x4x1xf32, #tpu.memory_space<vmem>>, vector<1x4x1xf32>
    %20 = vector.shape_cast %19 : vector<1x4x1xf32> to vector<4x1xf32>
    %21 = arith.mulf %5, %18 : vector<4x1xf32>
    %22 = arith.subf %20, %21 : vector<4x1xf32>
    %23 = vector.broadcast %18 : vector<4x1xf32> to vector<4x256xf32>
    %24 = arith.mulf %1, %23 : vector<4x256xf32>
    %25 = vector.broadcast %22 : vector<4x1xf32> to vector<4x256xf32>
    %26 = arith.addf %24, %25 : vector<4x256xf32>
    %c0_12 = arith.constant 0 : index
    %c0_13 = arith.constant 0 : index
    %c0_14 = arith.constant 0 : index
    %27 = vector.load %arg5[%c0_12, %c0_13, %c0_14] : memref<1x4x256xf32, #tpu.memory_space<vmem>>, vector<1x4x256xf32>
    %28 = vector.shape_cast %27 : vector<1x4x256xf32> to vector<4x256xf32>
    %29 = vector.shape_cast %26 : vector<4x256xf32> to vector<1x4x256xf32>
    tpu.vector_store %arg5[%c0_12, %c0_13, %c0_14], %29 {strides = array<i32>} : memref<1x4x256xf32, #tpu.memory_space<vmem>>, vector<1x4x256xf32>,
    return
  }
  func.func @transform_0(%arg0: i32, %arg1: i32) -> (i32, i32, i32) {
    %c0_i32 = arith.constant 0 : i32
    %c0_i32_0 = arith.constant 0 : i32
    return %arg0, %arg1, %c0_i32 : i32, i32, i32
  }
  func.func @transform_1(%arg0: i32, %arg1: i32) -> (i32, i32, i32) {
    %c0_i32 = arith.constant 0 : i32
    %c0_i32_0 = arith.constant 0 : i32
    return %arg0, %arg1, %c0_i32 : i32, i32, i32
  }
  func.func @transform_2(%arg0: i32, %arg1: i32) -> (i32, i32, i32) {
    %c0_i32 = arith.constant 0 : i32
    %c0_i32_0 = arith.constant 0 : i32
    return %arg0, %arg1, %c0_i32 : i32, i32, i32
  }
  func.func @transform_3(%arg0: i32, %arg1: i32) -> (i32, i32, i32) {
    %c0_i32 = arith.constant 0 : i32
    %c0_i32_0 = arith.constant 0 : i32
    return %arg0, %arg1, %c0_i32 : i32, i32, i32
  }
}

</mosaic_0001>

<bundles_post_ra>
// kernel: tpu_custom_call.1
= control target key start
LH: loop header
LB: loop body
LE: loop exit
PB: predicated region body
PF: predicated region fallthrough
CT: control target
= control target key end

     0   :  { %8 = vsyncpa [#allocation3], 0  ;;  %s759_s0 = inlined_call_operand.vmem [shape: f32[2,4,1], index: 0, kind: input, shape index: {}]   ;;  %s760_s1 = inlined_call_operand.vmem [shape: f32[2,4,1], index: 1, kind: input, shape index: {}]   ;;  %s761_s2 = inlined_call_operand.vmem [shape: f32[2,4,256], index: 2, kind: input, shape index: {}]   ;;  %s762_s3 = inlined_call_operand.hbm [shape: f32[2,4,256], index: 3, kind: output, shape index: {}]  }
   0x1   :  { %10 = vsyncpa [#allocation3 + $0x1], 0  ;;  %s643_s12 = smov 0   ;;  %s645_s13 = smov 0  }
   0x2   :  { %s647_s14 = smov 0   ;;  %s649_s15 = smov 0  }
   0x3   :  { %s651_s16 = smov 0   ;;  %s653_s17 = smov 0  }
   0x4 LB: > { %s459_s18 = sadd.s32 4294967295, %s618_s17   ;;  %s460_s19 = sadd.s32 4294967294, %s618_s17   ;;  %s618_s17 = sphi %s653_s17, %s16_s17   ;;  %s614_s16 = sphi %s651_s16, %s769_s16   ;;  %s610_s15 = sphi %s649_s15, %s768_s15   ;;  %s606_s14 = sphi %s647_s14, %s767_s14   ;;  %s602_s13 = sphi %s645_s13, %s766_s13   ;;  %s598_s12 = sphi %s643_s12, %s765_s12  }
   0x5   : > { %s28_s20 = sadd.s32 1, %s614_s16  ;;  %s121_s21 = sadd.s32 1, %s606_s14 }
   0x6   : > { %p30_p0 = scmp.ge.s32.totalorder %s28_s20, 2  ;;  %p131_p1 = scmp.ne.s32.totalorder %s606_s14, %s602_s13 }
   0x7   : > { %p132_p2 = scmp.eq.s32.totalorder %s459_s18, 1  ;;  %p137_p3 = scmp.ne.s32.totalorder %s602_s13, %s598_s12 }
   0x8   : > { %s771_s20 = smov (%p30_p0, %s28_s20), 0  ;;  %p138_p5 = scmp.eq.s32.totalorder %s460_s19, 1 }
   0x9   : > { %p683_p4 = por %p132_p2, %p131_p1  ;;  %s116_s23 = ssub.s32 %s614_s16, %s771_s20 }
   0xa   : > { %p463_p6 = scmp.ge.s32.totalorder %s618_s17, 1  ;;  %p119_p7 = scmp.eq.s32.totalorder %s116_s23, 0 }
   0xb   : > { %p690_p8 = por %p138_p5, %p137_p3  ;;  %p188_p9 = scmp.lt.s32.totalorder %s618_s17, 3 }
   0xc   : > { %s696_s25 = scalar_select %p119_p7, %s606_s14, %s121_s21  }
   0xd   : > { %p189_p10 = pnand %p463_p6, %p188_p9 }
   0xe   : > { %p230_p11 = scmp.lt.s32.totalorder (!%p189_p10), %s610_s15, 1  ;;  %s227_s11 = sand.u32 (!%p189_p10), 1, %s602_s13  }
   0xf   : > { %192 = sbr.rel (%p189_p10) target bundleno = 441 (0x1b9), region = 32  ;;  %s464_s18 = sshll.u32 (!%p189_p10), %s227_s11, 3 }
  0x10   : > { %s475_s19 = sshll.u32 (!%p189_p10), %s610_s15, 3 }
  0x14   : > { %s700_s26 = scalar_select %p230_p11, %s610_s15, 1  ;;  %vm260_vm0 = vcmask 1043456   ;;  %v620_v6 = vmov 256.0   ;;  %v621_v12 = vmov 839922192   ;;  %v622_v26 = vmov 0  }
  0x15   : > { %536 = vrcp.f32 %v620_v6  ;;  %v276_v13 = vunpack.c.l.s4 %v621_v12  ;;  %534 = vset.pattern.permute.xlu1 %v622_v26  ;;  %535 = vset.pattern.permute.xlu0 %v622_v26 }
  0x16   : > { %s474_s27 = sshll.u32 %s700_s26, 3  ;;  %s465_s4 = sshll.u32 %s700_s26, 2 }
  0x17   : > { %s252_s30 = scalar_lea.vmem %s761_s2, %s474_s27  ;;  %v277_v15 = vunpack.c.0.s8 %v276_v13  ;;  %s236_s7 = scalar_lea.vmem %s759_s0, %s465_s4 }
  0x18   : > { %v706_v0 = vld [vmem:[%s252_s30] sm:$0xff]  ;;  %s243_s10 = scalar_lea.vmem %s760_s1, %s465_s4  ;;  %s345_s26 = scalar_lea.hbm %s762_s3, %s475_s19 }
  0x19   : > { %255 = vst [vmem:[#allocation1] ss:$2 sm:$0xff] %v706_v0  ;;  %v294_v35 = vld [vmem:[%s236_s7] sm:$0xf]  ;;  %s229_s27 = scalar_lea.vmem [#allocation2], %s464_s18  ;;  %s349_s29 = sshll.u32 %s345_s26, 4  ;;  %s350_s29 = int_to_ptr.hbm [resolvable:$true] %s349_s29 }
  0x1a   : > { %v307_v40 = vld [vmem:[%s243_s10] sm:$0xf]  ;;  %s347_s28 = sshll.u32 %s229_s27, 4  ;;  %s332_s30 = scalar_lea.sflag [#allocation3], %s227_s11  ;;  %s348_s28 = int_to_ptr.vmem [resolvable:$true] %s347_s28 }
  0x1b   : > { %v537_v7 = vpop.eup %536  ;;  %s554_s4 = sshra.s32 %s350_s29, 4  ;;  %s560_s7 = scalar_lea.hbm %s762_s3, 16  ;;  %s555_s4 = int_to_ptr.hbm [resolvable:$true] %s554_s4 }
  0x1c   : > { %v267_v8 = vmul.f32 256.0, %v537_v7  ;;  %vm271_vm1 = vweird.f32 %v537_v7  ;;  %s556_s15 = scalar_lea.hbm %s555_s4, 8  ;;  %p561_p1 = scmp.lt.s32.totalorder %s555_s4, %s762_s3 }
  0x1d   : > { %p557_p12 = scmp.ne.s32.totalorder %s555_s4, %s556_s15  ;;  %p562_p2 = scmp.lt.s32.totalorder %s560_s7, %s556_s15 }
  0x1e   : > { %v268_v9 = vsub.f32 1.0, %v267_v8 }
  0x1f   : > { %p558_p13 = pnand %p557_p12, %p683_p4  ;;  %p563_p3 = por %p562_p2, %p561_p1 }
  0x20   : > { %v256_v1 = vld.sshfl [vmem:[#allocation1] sm:$0xff pattern:$0x75316420]  ;;  %v257_v2 = vld.sshfl [vmem:[#allocation1 + $0x8] sm:$0xff pattern:$0x75316420]  ;;  %v269_v10 = vmul.f32 %v537_v7, %v268_v9 }
  0x21   : > { %v261_v3 = vsel %vm260_vm0, %v256_v1, 0.0  ;;  %v262_v4 = vsel %vm260_vm0, %v257_v2, 0.0  ;;  %p559_p0 = pneg %p558_p13 }
  0x22   : > { %v263_v5 = vadd.f32 %v262_v4, %v261_v3  ;;  %v270_v11 = vadd.f32 %v537_v7, %v269_v10 }
  0x23   : > { %p564_p5 = pnand %p563_p3, %p559_p0 }
  0x24   : > { %264 = vadd.xlane.f32.xlu0 %v263_v5  ;;  %v272_v14 = vsel %vm271_vm1, %v537_v7, %v270_v11 }
  0x97   : > { %v265_v16 = vpop.xlane.xlu0 %264 }
  0x98   : > { %v273_v17 = vmul.f32 %v272_v14, %v265_v16 }
  0x9a   : > { %v278_v18 = vperm.slane %v273_v17, %v277_v15 }
  0x9c   : > { %v280_v19 = vsub.f32 %v706_v0, %v278_v18 }
  0x9e   : > { %v281_v20 = vmul.f32 %v280_v19, %v280_v19 }
  0xa0   : > { %283 = vst [vmem:[#allocation1] ss:$2 sm:$0xff] %v281_v20 }
  0xa7   : > { %v284_v21 = vld.sshfl [vmem:[#allocation1] sm:$0xff pattern:$0x75316420]  ;;  %v285_v22 = vld.sshfl [vmem:[#allocation1 + $0x8] sm:$0xff pattern:$0x75316420] }
  0xa8   : > { %v288_v23 = vsel %vm260_vm0, %v284_v21, 0.0  ;;  %v289_v24 = vsel %vm260_vm0, %v285_v22, 0.0 }
  0xa9   : > { %v290_v25 = vadd.f32 %v289_v24, %v288_v23 }
  0xab   : > { %291 = vadd.xlane.f32.xlu0 %v290_v25 }
 0x11e   : > { %v292_v27 = vpop.xlane.xlu0 %291 }
 0x11f   : > { %v293_v28 = vmul.f32 %v292_v27, %v272_v14 }
 0x121   : > { %v295_v29 = vadd.f32 1e-05, %v293_v28 }
 0x123   : > { %538 = vrsqrt.f32 %v295_v29  ;;  %vm302_vm3 = vweird.f32 %v295_v29 }
 0x129   : > { %v539_v30 = vpop.eup %538 }
 0x12a   : > { %v297_v31 = vmul.f32 %v539_v30, %v295_v29  ;;  %vm303_vm2 = vweird.f32 %v539_v30 }
 0x12b   : > { %vm304_vm4 = vmor %vm302_vm3, %vm303_vm2 }
 0x12c   : > { %v298_v32 = vmul.f32 %v539_v30, %v297_v31 }
 0x12e   : > { %v299_v33 = vmul.f32 0.5, %v298_v32 }
 0x130   : > { %v300_v34 = vsub.f32 1.5, %v299_v33 }
 0x132   : > { %v301_v36 = vmul.f32 %v539_v30, %v300_v34 }
 0x134   : > { %v305_v37 = vsel %vm304_vm4, %v539_v30, %v301_v36 }
 0x135   : > { %v306_v38 = vmul.f32 %v305_v37, %v294_v35 }
 0x137   : > { %312 = vperm.xlu1 %534, %v306_v38   ;;  %v308_v39 = vmul.f32 %v306_v38, %v273_v17 }
 0x139   : > { %v309_v41 = vsub.f32 %v307_v40, %v308_v39 }
 0x13f   : > { %322 = vperm.xlu1 %534, %v309_v41  }
 0x1a9   : > { %v313_v42 = vpop.permute.xlu1 %312 }
 0x1aa   : > { %v317_v43 = vperm.slane %v313_v42, %v277_v15 }
 0x1ac   : > { %v319_v45 = vmul.f32 %v317_v43, %v706_v0 }
 0x1b1   : > { %v323_v44 = vpop.permute.xlu1 %322 }
 0x1b2   : > { %v327_v46 = vperm.slane %v323_v44, %v277_v15 }
 0x1b4   : > { %v329_v47 = vadd.f32 %v327_v46, %v319_v45 }
 0x1b6   : > { %330 = vst [vmem:[%s229_s27] sm:$0xff] %v329_v47 }
 0x1b7   : > { %567 = shalt.err (!%p564_p5)
}
 0x1b8   : > { %476 = dma.vmem_to_hbm [thread:$0]  (%p683_p4), %s348_s28, 128, %s350_s29, %s332_s30  }
 0x1b9 PF: > { %p482_p6 = scmp.ge.s32.totalorder %s618_s17, 2  ;;  %s361_s10 = sand.u32 1, %s598_s12  }
 0x1ba   : > { %s362_s11 = scalar_lea.sflag [#allocation3], %s361_s10 }
 0x1bb   : > { %p479_p7 = pnand %p482_p6, %p690_p8 }
 0x1bd   : > { %p480_p9 = pneg %p479_p7 }
 0x1bf   : > { %593 = dma.done.wait (%p480_p9), %s362_s11, 128  }
 0x1c0   : > { %595 = vsyncadd (%p480_p9), %s362_s11, 4294967168  ;;  %s16_s17 = sadd.s32 1, %s618_s17   ;;  %s765_s12 = smov %s602_s13 }
 0x1c1   : > { %p13_p10 = scmp.ge.s32.totalorder %s16_s17, 4   ;;  %s766_s13 = smov %s606_s14 }
 0x1c2   : > { %s767_s14 = smov %s696_s25  ;;  %s768_s15 = smov %s614_s16 }
 0x1c3   : > { %s769_s16 = smov %s771_s20  ;;  %15 = sbr.rel (!%p13_p10) target bundleno = 4 (0x4), region = 73 }
 0x1c8   :  { %368 = vsyncpa [#allocation3], 1 }
 0x1c9   :  { %370 = vsyncpa [#allocation3 + $0x1], 1 }

</bundles_post_ra>
